<compile_context>
chip_gen: v7x
topology: tpu7x:2x2x1
jax: 0.10.0
libtpu: 0.0.40
codegen_flags: <defaults>
</compile_context>

<pallas_src>
import functools

import jax
import jax.numpy as jnp
from jax import lax
from jax.experimental import pallas as pl
from jax.experimental.pallas import tpu as pltpu

_BIG = 1e30  # f32 distance sentinel for invalid (other-graph / self) candidates


def _pick_tile(n, max_tile=512):
    """Row-tile size: big tiles for MXU occupancy and low per-step overhead, while
    keeping >=2 grid steps when possible (v7x shards a 'parallel' axis over 2 TCs)."""
    if n <= max_tile:
        if n % 16 == 0 and n >= 16:
            return n // 2
        return n
    for t in range(max_tile, 7, -8):
        if n % t == 0:
            return t
    return n


# ----------------------------------------------------------------------------
# Kernel 1: fused ParticleDynamicEdgeConv layer
#   (distances + mask + in-kernel top-k + one-hot gather + edge MLP slab
#    + mean aggregation + skip Linear->BN + add + ReLU)
#   BatchNorm is folded into scale/bias (eval mode).
#   The first edge Linear W1 (2C -> H0) is split into W1a (acts on x_i, shared
#   across the k edges) and W1b (acts on x_j - x_i).
# ----------------------------------------------------------------------------
def _conv_layer_kernel(pts_row_ref, pts_all_ref, fts_row_ref, fts_all_ref,
                       brow_ref, bcol_ref,
                       w1a_ref, w1b_ref, s1_ref, b1_ref,
                       w2_ref, s2_ref, b2_ref,
                       w3_ref, s3_ref, b3_ref,
                       wsk_ref, ssk_ref, bsk_ref,
                       out_ref, *, k, tile_n, n_total):
    f32 = jnp.float32
    pts_r = pts_row_ref[...]                        # (T, D)  query rows of this tile
    pts_a = pts_all_ref[...]                        # (N, D)  all candidate neighbors
    x_i = fts_row_ref[...]                          # (T, C)  center features
    x_all = fts_all_ref[...]                        # (N, C)  gather source (VMEM-resident)

    # ---- pairwise squared distances (row tile vs all nodes), fully in-kernel ----
    nt = (((1,), (1,)), ((), ()))                   # contract last dims (A @ B^T form)
    gram = lax.dot_general(pts_r, pts_a, nt, preferred_element_type=f32)        # (T, N)
    sq_r = jnp.sum(pts_r * pts_r, axis=1, keepdims=True)                        # (T, 1)
    sq_c = lax.dot_general(jnp.ones_like(pts_r), pts_a * pts_a, nt,
                           preferred_element_type=f32)                          # (T, N)
    d2 = sq_r + sq_c - 2.0 * gram

    # ---- validity mask from batch ids + iota (no (N,N) HBM mask traffic) ----
    row_ids = (lax.broadcasted_iota(jnp.int32, (tile_n, n_total), 0)
               + pl.program_id(0) * tile_n)
    col_ids = lax.broadcasted_iota(jnp.int32, (tile_n, n_total), 1)
    valid = jnp.logical_and(brow_ref[...] == bcol_ref[...], row_ids != col_ids)
    dist = jnp.where(valid, d2, _BIG)

    # ---- in-kernel top-k: k iterative masked argmins as one-hot selector rows ----
    # NOTE: if a graph has < k valid neighbors, sentinel candidates get selected
    # (same as the previous top_k-based version); fine for the test shapes here.
    col_f = col_ids.astype(f32)
    onehots = []
    work = dist
    for _ in range(k):
        m = jnp.min(work, axis=1, keepdims=True)                        # (T, 1)
        first = jnp.min(jnp.where(work == m, col_f, float(n_total)),
                        axis=1, keepdims=True)                          # tie-break: lowest col
        sel = col_f == first                                            # (T, N) one-hot
        onehots.append(sel.astype(f32))
        work = jnp.where(sel, _BIG, work)

    # ---- gather all k neighbors with ONE (k*T, N) @ (N, C) matmul ----
    # TODO(synk): for very large N, replace the one-hot gather matmul with a
    # per-row DMA gather (make_async_copy + SMEM indices) to avoid O(N^2*C) FLOPs.
    onehot_slab = jnp.concatenate(onehots, axis=0)                      # (k*T, N)
    xj_slab = jnp.dot(onehot_slab, x_all, preferred_element_type=f32)   # (k*T, C)
    x_i_slab = jnp.concatenate([x_i] * k, axis=0)                       # (k*T, C)
    diff_slab = xj_slab - x_i_slab                                      # x_j - x_i

    # ---- edge MLP on the whole (k*T, .) slab: 3x Linear->BN(eval)->ReLU ----
    h_center = jnp.dot(x_i, w1a_ref[...], preferred_element_type=f32)   # (T, H0), shared
    h = (jnp.concatenate([h_center] * k, axis=0)
         + jnp.dot(diff_slab, w1b_ref[...], preferred_element_type=f32))
    h = jnp.maximum(h * s1_ref[...] + b1_ref[...], 0.0)
    h = jnp.dot(h, w2_ref[...], preferred_element_type=f32)
    h = jnp.maximum(h * s2_ref[...] + b2_ref[...], 0.0)
    h = jnp.dot(h, w3_ref[...], preferred_element_type=f32)
    h = jnp.maximum(h * s3_ref[...] + b3_ref[...], 0.0)                 # (k*T, H2)

    # ---- mean over the k neighbors (aggr='mean') ----
    acc = h[0:tile_n, :]
    for j in range(1, k):
        acc = acc + h[j * tile_n:(j + 1) * tile_n, :]
    aggr = acc * (1.0 / k)

    # ---- skip branch: Linear -> BN(eval folded), then add + ReLU ----
    skip = jnp.dot(x_i, wsk_ref[...], preferred_element_type=f32)
    skip = skip * ssk_ref[...] + bsk_ref[...]
    out_ref[...] = jnp.maximum(aggr + skip, 0.0)


def dynamic_edge_conv(pts, fts, brow, bcol, p, k):
    n, d = pts.shape
    c = fts.shape[1]
    h2 = p["w3"].shape[1]
    tile_n = _pick_tile(n)
    grid = (n // tile_n,)

    row_map = lambda i: (i, 0)
    full_map = lambda i: (0, 0)
    in_specs = [
        pl.BlockSpec((tile_n, d), row_map),   # pts rows (queries)
        pl.BlockSpec((n, d), full_map),       # pts all  (candidates)
        pl.BlockSpec((tile_n, c), row_map),   # fts rows (x_i)
        pl.BlockSpec((n, c), full_map),       # fts all  (gather source)
        pl.BlockSpec((tile_n, 1), row_map),   # batch id per query row
        pl.BlockSpec((1, n), full_map),       # batch id per candidate col
    ]
    wnames = ["w1a", "w1b", "s1", "b1", "w2", "s2", "b2",
              "w3", "s3", "b3", "wsk", "ssk", "bsk"]
    for name in wnames:
        in_specs.append(pl.BlockSpec(p[name].shape, full_map))

    return pl.pallas_call(
        functools.partial(_conv_layer_kernel, k=k, tile_n=tile_n, n_total=n),
        out_shape=jax.ShapeDtypeStruct((n, h2), jnp.float32),
        grid=grid,
        in_specs=in_specs,
        out_specs=pl.BlockSpec((tile_n, h2), row_map),
        compiler_params=pltpu.CompilerParams(
            dimension_semantics=("parallel",),        # shards node tiles over v7x's 2 TCs
            vmem_limit_bytes=48 * 1024 * 1024),       # stay under v7x's 64 MiB/TC VMEM
    )(pts, pts, fts, fts, brow, bcol, *[p[name] for name in wnames])


# ----------------------------------------------------------------------------
# Kernel 2: classification head
#   global_mean_pool (one-hot membership matmul) + fc layers
#   (Linear + Dropout[=identity at inference] + ReLU) + output Linear
#   + Softmax over dim=0 (across graphs, as in the torch module).
# ----------------------------------------------------------------------------
def _head_kernel(fts_ref, bcol_ref, *refs, n_fc, num_graphs):
    f32 = jnp.float32
    out_ref = refs[-1]
    wrefs = refs[:-1]
    fts = fts_ref[...]                                      # (N, C)
    n = fts.shape[0]
    # global_mean_pool: membership (G, N) built in-kernel, pooled via MXU
    member = (lax.broadcasted_iota(jnp.int32, (num_graphs, n), 0)
              == bcol_ref[...]).astype(f32)                 # (G, N)
    counts = jnp.sum(member, axis=1, keepdims=True)         # (G, 1)
    h = jnp.dot(member, fts, preferred_element_type=f32) / counts
    for l in range(n_fc):                                   # Dropout is identity in eval
        w = wrefs[2 * l][...]
        b = wrefs[2 * l + 1][...]
        h = jnp.maximum(jnp.dot(h, w, preferred_element_type=f32) + b, 0.0)
    logits = jnp.dot(h, wrefs[-2][...], preferred_element_type=f32) + wrefs[-1][...]
    m = jnp.max(logits, axis=0, keepdims=True)              # Softmax(dim=0), per torch spec
    e = jnp.exp(logits - m)
    out_ref[...] = e / jnp.sum(e, axis=0, keepdims=True)


def head(fts, bcol, fc_params, out_w, out_b, num_graphs):
    nclass = out_w.shape[1]
    full_map = lambda i: (0, 0)
    args = [fts, bcol]
    for w, b in fc_params:
        args += [w, b]
    args += [out_w, out_b]
    in_specs = [pl.BlockSpec(a.shape, full_map) for a in args]
    return pl.pallas_call(
        functools.partial(_head_kernel, n_fc=len(fc_params), num_graphs=num_graphs),
        out_shape=jax.ShapeDtypeStruct((num_graphs, nclass), jnp.float32),
        grid=(1,),
        in_specs=in_specs,
        out_specs=pl.BlockSpec((num_graphs, nclass), full_map),
    )(*args)


# ----------------------------------------------------------------------------
# Parameter init (deterministic, synthetic) + full forward
# ----------------------------------------------------------------------------
def make_params(key, settings):
    eps = 1e-5
    keys = jax.random.split(key, 128)
    kit = iter(range(128))

    def nk():
        return keys[next(kit)]

    def linear_w(fan_in, fan_out):
        bound = float(1.0 / (fan_in ** 0.5))
        return jax.random.uniform(nk(), (fan_in, fan_out), jnp.float32, -bound, bound)

    def bn_fold(ch):
        # BatchNorm in eval mode with fresh running stats (mean=0, var=1),
        # gamma/beta initialized deterministically; folded into scale/bias.
        gamma = 1.0 + 0.1 * jax.random.normal(nk(), (1, ch), jnp.float32)
        beta = 0.1 * jax.random.normal(nk(), (1, ch), jnp.float32)
        return gamma / jnp.sqrt(1.0 + eps), beta

    params = {}
    cin = settings["input_features"]
    params["in_bn_s"], params["in_bn_b"] = bn_fold(cin)

    convs = []
    prev = cin
    for _k, chans in settings["conv_params"]:
        h0, h1, h2 = chans
        p = {}
        p["w1a"] = linear_w(prev, h0)          # acts on x_i      (first half of 2C->H0)
        p["w1b"] = linear_w(prev, h0)          # acts on x_j-x_i  (second half)
        p["s1"], p["b1"] = bn_fold(h0)
        p["w2"] = linear_w(h0, h1)
        p["s2"], p["b2"] = bn_fold(h1)
        p["w3"] = linear_w(h1, h2)
        p["s3"], p["b3"] = bn_fold(h2)
        p["wsk"] = linear_w(prev, h2)          # skip_mlp Linear (no bias)
        p["ssk"], p["bsk"] = bn_fold(h2)       # skip_mlp BatchNorm
        convs.append(p)
        prev = h2
    params["convs"] = convs

    fcs = []
    for _drop, units in settings["fc_params"]:
        w = linear_w(prev, units)
        b = 0.1 * jax.random.normal(nk(), (1, units), jnp.float32)
        fcs.append((w, b))
        prev = units
    params["fc"] = fcs

    params["out_w"] = linear_w(prev, settings["output_classes"])
    params["out_b"] = 0.1 * jax.random.normal(
        nk(), (1, settings["output_classes"]), jnp.float32)
    return params


def particle_net_forward(x, pos, batch_ids, params, settings, num_graphs):
    n = x.shape[0]
    brow = batch_ids.astype(jnp.int32).reshape(n, 1)   # tiny glue (layout only)
    bcol = batch_ids.astype(jnp.int32).reshape(1, n)

    # input BatchNorm (eval, folded to scale/bias) -- tiny elementwise glue
    fts = x * params["in_bn_s"] + params["in_bn_b"]
    pts = pos
    for (k, _chans), p in zip(settings["conv_params"], params["convs"]):
        fts = dynamic_edge_conv(pts, fts, brow, bcol, p, k)   # fused kNN + EdgeConv
        pts = fts

    # pooling + fc stack + output Linear + Softmax(dim=0), fused in one kernel
    return head(fts, bcol, params["fc"], params["out_w"], params["out_b"], num_graphs)


if __name__ == "__main__":
    settings = {
        "input_features": 4,
        "conv_params": [(4, (8, 8, 8)), (3, (16, 16, 16))],   # (K, channels)
        "fc_params": [(0.1, 32), (0.1, 16)],                  # (drop_rate, units)
        "output_classes": 5,
    }
    num_graphs = 2
    pts_per_graph = 16
    n = num_graphs * pts_per_graph

    key = jax.random.PRNGKey(0)
    kx, kp, kw = jax.random.split(key, 3)
    x = jax.random.normal(kx, (n, settings["input_features"]), jnp.float32)
    pos = jax.random.normal(kp, (n, 2), jnp.float32)
    batch_ids = jnp.repeat(jnp.arange(num_graphs, dtype=jnp.int32), pts_per_graph)

    params = make_params(kw, settings)
    out = particle_net_forward(x, pos, batch_ids, params, settings, num_graphs)
    out = jax.block_until_ready(out)
    assert out.shape == (num_graphs, settings["output_classes"])
    assert bool(jnp.all(jnp.isfinite(out)))
    print("KERNEL_OK")
</pallas_src>

<mosaic_0001>
module attributes {stable_mosaic.version = 11 : i64} {
  func.func @_conv_layer_kernel(%arg0: i32, %arg1: memref<16x2xf32, #tpu.memory_space<vmem>>, %arg2: memref<32x2xf32, #tpu.memory_space<vmem>>, %arg3: memref<16x4xf32, #tpu.memory_space<vmem>>, %arg4: memref<32x4xf32, #tpu.memory_space<vmem>>, %arg5: memref<16x1xi32, #tpu.memory_space<vmem>>, %arg6: memref<1x32xi32, #tpu.memory_space<vmem>>, %arg7: memref<4x8xf32, #tpu.memory_space<vmem>>, %arg8: memref<4x8xf32, #tpu.memory_space<vmem>>, %arg9: memref<1x8xf32, #tpu.memory_space<vmem>>, %arg10: memref<1x8xf32, #tpu.memory_space<vmem>>, %arg11: memref<8x8xf32, #tpu.memory_space<vmem>>, %arg12: memref<1x8xf32, #tpu.memory_space<vmem>>, %arg13: memref<1x8xf32, #tpu.memory_space<vmem>>, %arg14: memref<8x8xf32, #tpu.memory_space<vmem>>, %arg15: memref<1x8xf32, #tpu.memory_space<vmem>>, %arg16: memref<1x8xf32, #tpu.memory_space<vmem>>, %arg17: memref<4x8xf32, #tpu.memory_space<vmem>>, %arg18: memref<1x8xf32, #tpu.memory_space<vmem>>, %arg19: memref<1x8xf32, #tpu.memory_space<vmem>>, %arg20: memref<16x8xf32, #tpu.memory_space<vmem>>) attributes {dimension_semantics = [#tpu.dimension_semantics<parallel>], iteration_bounds = array<i64: 2>, scalar_prefetch = 0 : i64, scratch_operands = 0 : i64, tpu.core_type = #tpu.core_type<tc>, window_params = [{transform_indices = @transform_0, window_bounds = array<i64: 16, 2>}, {pipeline_mode = #tpu.pipeline_mode<synchronous>, transform_indices = @transform_1, window_bounds = array<i64: 32, 2>}, {transform_indices = @transform_2, window_bounds = array<i64: 16, 4>}, {pipeline_mode = #tpu.pipeline_mode<synchronous>, transform_indices = @transform_3, window_bounds = array<i64: 32, 4>}, {transform_indices = @transform_4, window_bounds = array<i64: 16, 1>}, {pipeline_mode = #tpu.pipeline_mode<synchronous>, transform_indices = @transform_5, window_bounds = array<i64: 1, 32>}, {pipeline_mode = #tpu.pipeline_mode<synchronous>, transform_indices = @transform_6, window_bounds = array<i64: 4, 8>}, {pipeline_mode = #tpu.pipeline_mode<synchronous>, transform_indices = @transform_7, window_bounds = array<i64: 4, 8>}, {pipeline_mode = #tpu.pipeline_mode<synchronous>, transform_indices = @transform_8, window_bounds = array<i64: 1, 8>}, {pipeline_mode = #tpu.pipeline_mode<synchronous>, transform_indices = @transform_9, window_bounds = array<i64: 1, 8>}, {pipeline_mode = #tpu.pipeline_mode<synchronous>, transform_indices = @transform_10, window_bounds = array<i64: 8, 8>}, {pipeline_mode = #tpu.pipeline_mode<synchronous>, transform_indices = @transform_11, window_bounds = array<i64: 1, 8>}, {pipeline_mode = #tpu.pipeline_mode<synchronous>, transform_indices = @transform_12, window_bounds = array<i64: 1, 8>}, {pipeline_mode = #tpu.pipeline_mode<synchronous>, transform_indices = @transform_13, window_bounds = array<i64: 8, 8>}, {pipeline_mode = #tpu.pipeline_mode<synchronous>, transform_indices = @transform_14, window_bounds = array<i64: 1, 8>}, {pipeline_mode = #tpu.pipeline_mode<synchronous>, transform_indices = @transform_15, window_bounds = array<i64: 1, 8>}, {pipeline_mode = #tpu.pipeline_mode<synchronous>, transform_indices = @transform_16, window_bounds = array<i64: 4, 8>}, {pipeline_mode = #tpu.pipeline_mode<synchronous>, transform_indices = @transform_17, window_bounds = array<i64: 1, 8>}, {pipeline_mode = #tpu.pipeline_mode<synchronous>, transform_indices = @transform_18, window_bounds = array<i64: 1, 8>}, {transform_indices = @transform_19, window_bounds = array<i64: 16, 8>}]} {
    %c0 = arith.constant 0 : index
    %c0_0 = arith.constant 0 : index
    %0 = vector.load %arg1[%c0, %c0_0] : memref<16x2xf32, #tpu.memory_space<vmem>>, vector<16x2xf32>
    %c0_1 = arith.constant 0 : index
    %c0_2 = arith.constant 0 : index
    %1 = vector.load %arg2[%c0_1, %c0_2] : memref<32x2xf32, #tpu.memory_space<vmem>>, vector<32x2xf32>
    %c0_3 = arith.constant 0 : index
    %c0_4 = arith.constant 0 : index
    %2 = vector.load %arg3[%c0_3, %c0_4] : memref<16x4xf32, #tpu.memory_space<vmem>>, vector<16x4xf32>
    %c0_5 = arith.constant 0 : index
    %c0_6 = arith.constant 0 : index
    %3 = vector.load %arg4[%c0_5, %c0_6] : memref<32x4xf32, #tpu.memory_space<vmem>>, vector<32x4xf32>
    %cst = arith.constant dense<0.000000e+00> : vector<16x32xf32>
    %4 = tpu.matmul %0, %1, %cst {dimension_numbers = #tpu.dot_dimension_numbers<[1], [1], [0], [0], [0, 0, 1, 0], [], []>} : vector<16x2xf32>, vector<32x2xf32>, vector<16x32xf32> -> vector<16x32xf32>
    %5 = arith.mulf %0, %0 : vector<16x2xf32>
    %cst_7 = arith.constant dense<0.000000e+00> : vector<16xf32>
    %6 = vector.multi_reduction <add>, %5, %cst_7 [1] : vector<16x2xf32> to vector<16xf32>
    %7 = vector.shape_cast %6 : vector<16xf32> to vector<16x1xf32>
    %cst_8 = arith.constant 1.000000e+00 : f32
    %8 = vector.broadcast %cst_8 : f32 to vector<16x2xf32>
    %9 = arith.mulf %1, %1 : vector<32x2xf32>
    %cst_9 = arith.constant dense<0.000000e+00> : vector<16x32xf32>
    %10 = tpu.matmul %8, %9, %cst_9 {dimension_numbers = #tpu.dot_dimension_numbers<[1], [1], [0], [0], [0, 0, 1, 0], [], []>} : vector<16x2xf32>, vector<32x2xf32>, vector<16x32xf32> -> vector<16x32xf32>
    %11 = vector.broadcast %7 : vector<16x1xf32> to vector<16x32xf32>
    %12 = arith.addf %11, %10 : vector<16x32xf32>
    %cst_10 = arith.constant 2.000000e+00 : f32
    %13 = vector.broadcast %cst_10 : f32 to vector<16x32xf32>
    %14 = arith.mulf %13, %4 : vector<16x32xf32>
    %15 = arith.subf %12, %14 : vector<16x32xf32>
    %16 = tpu.iota {dimensions = array<i32: 0>} : vector<16x32xi32>
    %c16_i32 = arith.constant 16 : i32
    %17 = arith.muli %arg0, %c16_i32 : i32
    %18 = vector.broadcast %17 : i32 to vector<16x32xi32>
    %19 = arith.addi %16, %18 : vector<16x32xi32>
    %20 = tpu.iota {dimensions = array<i32: 1>} : vector<16x32xi32>
    %c0_11 = arith.constant 0 : index
    %c0_12 = arith.constant 0 : index
    %21 = vector.load %arg5[%c0_11, %c0_12] : memref<16x1xi32, #tpu.memory_space<vmem>>, vector<16x1xi32>
    %c0_13 = arith.constant 0 : index
    %c0_14 = arith.constant 0 : index
    %22 = vector.load %arg6[%c0_13, %c0_14] : memref<1x32xi32, #tpu.memory_space<vmem>>, vector<1x32xi32>
    %23 = vector.broadcast %21 : vector<16x1xi32> to vector<16x32xi32>
    %24 = vector.broadcast %22 : vector<1x32xi32> to vector<16x32xi32>
    %25 = arith.cmpi eq, %23, %24 : vector<16x32xi32>
    %26 = arith.cmpi ne, %19, %20 : vector<16x32xi32>
    %27 = arith.andi %25, %26 : vector<16x32xi1>
    %cst_15 = arith.constant 1.000000e+30 : f32
    %28 = vector.broadcast %cst_15 : f32 to vector<16x32xf32>
    %29 = arith.select %27, %15, %28 : vector<16x32xi1>, vector<16x32xf32>
    %30 = arith.sitofp %20 : vector<16x32xi32> to vector<16x32xf32>
    %cst_16 = arith.constant dense<0x7F800000> : vector<16xf32>
    %31 = vector.multi_reduction <minimumf>, %29, %cst_16 [1] : vector<16x32xf32> to vector<16xf32>
    %32 = vector.shape_cast %31 : vector<16xf32> to vector<16x1xf32>
    %33 = vector.broadcast %32 : vector<16x1xf32> to vector<16x32xf32>
    %34 = arith.cmpf oeq, %29, %33 : vector<16x32xf32>
    %cst_17 = arith.constant 3.200000e+01 : f32
    %35 = vector.broadcast %cst_17 : f32 to vector<16x32xf32>
    %36 = arith.select %34, %30, %35 : vector<16x32xi1>, vector<16x32xf32>
    %cst_18 = arith.constant dense<0x7F800000> : vector<16xf32>
    %37 = vector.multi_reduction <minimumf>, %36, %cst_18 [1] : vector<16x32xf32> to vector<16xf32>
    %38 = vector.shape_cast %37 : vector<16xf32> to vector<16x1xf32>
    %39 = vector.broadcast %38 : vector<16x1xf32> to vector<16x32xf32>
    %40 = arith.cmpf oeq, %30, %39 : vector<16x32xf32>
    %41 = arith.extui %40 : vector<16x32xi1> to vector<16x32xi32>
    %42 = arith.sitofp %41 : vector<16x32xi32> to vector<16x32xf32>
    %cst_19 = arith.constant 1.000000e+30 : f32
    %43 = vector.broadcast %cst_19 : f32 to vector<16x32xf32>
    %44 = arith.select %40, %43, %29 : vector<16x32xi1>, vector<16x32xf32>
    %cst_20 = arith.constant dense<0x7F800000> : vector<16xf32>
    %45 = vector.multi_reduction <minimumf>, %44, %cst_20 [1] : vector<16x32xf32> to vector<16xf32>
    %46 = vector.shape_cast %45 : vector<16xf32> to vector<16x1xf32>
    %47 = vector.broadcast %46 : vector<16x1xf32> to vector<16x32xf32>
    %48 = arith.cmpf oeq, %44, %47 : vector<16x32xf32>
    %cst_21 = arith.constant 3.200000e+01 : f32
    %49 = vector.broadcast %cst_21 : f32 to vector<16x32xf32>
    %50 = arith.select %48, %30, %49 : vector<16x32xi1>, vector<16x32xf32>
    %cst_22 = arith.constant dense<0x7F800000> : vector<16xf32>
    %51 = vector.multi_reduction <minimumf>, %50, %cst_22 [1] : vector<16x32xf32> to vector<16xf32>
    %52 = vector.shape_cast %51 : vector<16xf32> to vector<16x1xf32>
    %53 = vector.broadcast %52 : vector<16x1xf32> to vector<16x32xf32>
    %54 = arith.cmpf oeq, %30, %53 : vector<16x32xf32>
    %55 = arith.extui %54 : vector<16x32xi1> to vector<16x32xi32>
    %56 = arith.sitofp %55 : vector<16x32xi32> to vector<16x32xf32>
    %cst_23 = arith.constant 1.000000e+30 : f32
    %57 = vector.broadcast %cst_23 : f32 to vector<16x32xf32>
    %58 = arith.select %54, %57, %44 : vector<16x32xi1>, vector<16x32xf32>
    %cst_24 = arith.constant dense<0x7F800000> : vector<16xf32>
    %59 = vector.multi_reduction <minimumf>, %58, %cst_24 [1] : vector<16x32xf32> to vector<16xf32>
    %60 = vector.shape_cast %59 : vector<16xf32> to vector<16x1xf32>
    %61 = vector.broadcast %60 : vector<16x1xf32> to vector<16x32xf32>
    %62 = arith.cmpf oeq, %58, %61 : vector<16x32xf32>
    %cst_25 = arith.constant 3.200000e+01 : f32
    %63 = vector.broadcast %cst_25 : f32 to vector<16x32xf32>
    %64 = arith.select %62, %30, %63 : vector<16x32xi1>, vector<16x32xf32>
    %cst_26 = arith.constant dense<0x7F800000> : vector<16xf32>
    %65 = vector.multi_reduction <minimumf>, %64, %cst_26 [1] : vector<16x32xf32> to vector<16xf32>
    %66 = vector.shape_cast %65 : vector<16xf32> to vector<16x1xf32>
    %67 = vector.broadcast %66 : vector<16x1xf32> to vector<16x32xf32>
    %68 = arith.cmpf oeq, %30, %67 : vector<16x32xf32>
    %69 = arith.extui %68 : vector<16x32xi1> to vector<16x32xi32>
    %70 = arith.sitofp %69 : vector<16x32xi32> to vector<16x32xf32>
    %cst_27 = arith.constant 1.000000e+30 : f32
    %71 = vector.broadcast %cst_27 : f32 to vector<16x32xf32>
    %72 = arith.select %68, %71, %58 : vector<16x32xi1>, vector<16x32xf32>
    %cst_28 = arith.constant dense<0x7F800000> : vector<16xf32>
    %73 = vector.multi_reduction <minimumf>, %72, %cst_28 [1] : vector<16x32xf32> to vector<16xf32>
    %74 = vector.shape_cast %73 : vector<16xf32> to vector<16x1xf32>
    %75 = vector.broadcast %74 : vector<16x1xf32> to vector<16x32xf32>
    %76 = arith.cmpf oeq, %72, %75 : vector<16x32xf32>
    %cst_29 = arith.constant 3.200000e+01 : f32
    %77 = vector.broadcast %cst_29 : f32 to vector<16x32xf32>
    %78 = arith.select %76, %30, %77 : vector<16x32xi1>, vector<16x32xf32>
    %cst_30 = arith.constant dense<0x7F800000> : vector<16xf32>
    %79 = vector.multi_reduction <minimumf>, %78, %cst_30 [1] : vector<16x32xf32> to vector<16xf32>
    %80 = vector.shape_cast %79 : vector<16xf32> to vector<16x1xf32>
    %81 = vector.broadcast %80 : vector<16x1xf32> to vector<16x32xf32>
    %82 = arith.cmpf oeq, %30, %81 : vector<16x32xf32>
    %83 = arith.extui %82 : vector<16x32xi1> to vector<16x32xi32>
    %84 = arith.sitofp %83 : vector<16x32xi32> to vector<16x32xf32>
    %85 = tpu.concatenate %42, %56, %70, %84 in 0 : vector<16x32xf32>, vector<16x32xf32>, vector<16x32xf32>, vector<16x32xf32> -> vector<64x32xf32>
    %cst_31 = arith.constant dense<0.000000e+00> : vector<64x4xf32>
    %86 = tpu.matmul %85, %3, %cst_31 {dimension_numbers = #tpu.dot_dimension_numbers<[1], [0], [0], [1], [0, 0, 1, 1], [], []>} : vector<64x32xf32>, vector<32x4xf32>, vector<64x4xf32> -> vector<64x4xf32>
    %87 = tpu.concatenate %2, %2, %2, %2 in 0 : vector<16x4xf32>, vector<16x4xf32>, vector<16x4xf32>, vector<16x4xf32> -> vector<64x4xf32>
    %88 = arith.subf %86, %87 : vector<64x4xf32>
    %c0_32 = arith.constant 0 : index
    %c0_33 = arith.constant 0 : index
    %89 = vector.load %arg7[%c0_32, %c0_33] : memref<4x8xf32, #tpu.memory_space<vmem>>, vector<4x8xf32>
    %cst_34 = arith.constant dense<0.000000e+00> : vector<16x8xf32>
    %90 = tpu.matmul %2, %89, %cst_34 {dimension_numbers = #tpu.dot_dimension_numbers<[1], [0], [0], [1], [0, 0, 1, 1], [], []>} : vector<16x4xf32>, vector<4x8xf32>, vector<16x8xf32> -> vector<16x8xf32>
    %91 = tpu.concatenate %90, %90, %90, %90 in 0 : vector<16x8xf32>, vector<16x8xf32>, vector<16x8xf32>, vector<16x8xf32> -> vector<64x8xf32>
    %c0_35 = arith.constant 0 : index
    %c0_36 = arith.constant 0 : index
    %92 = vector.load %arg8[%c0_35, %c0_36] : memref<4x8xf32, #tpu.memory_space<vmem>>, vector<4x8xf32>
    %cst_37 = arith.constant dense<0.000000e+00> : vector<64x8xf32>
    %93 = tpu.matmul %88, %92, %cst_37 {dimension_numbers = #tpu.dot_dimension_numbers<[1], [0], [0], [1], [0, 0, 1, 1], [], []>} : vector<64x4xf32>, vector<4x8xf32>, vector<64x8xf32> -> vector<64x8xf32>
    %94 = arith.addf %91, %93 : vector<64x8xf32>
    %c0_38 = arith.constant 0 : index
    %c0_39 = arith.constant 0 : index
    %95 = vector.load %arg9[%c0_38, %c0_39] : memref<1x8xf32, #tpu.memory_space<vmem>>, vector<1x8xf32>
    %96 = vector.broadcast %95 : vector<1x8xf32> to vector<64x8xf32>
    %97 = arith.mulf %94, %96 : vector<64x8xf32>
    %c0_40 = arith.constant 0 : index
    %c0_41 = arith.constant 0 : index
    %98 = vector.load %arg10[%c0_40, %c0_41] : memref<1x8xf32, #tpu.memory_space<vmem>>, vector<1x8xf32>
    %99 = vector.broadcast %98 : vector<1x8xf32> to vector<64x8xf32>
    %100 = arith.addf %97, %99 : vector<64x8xf32>
    %cst_42 = arith.constant 0.000000e+00 : f32
    %101 = vector.broadcast %cst_42 : f32 to vector<64x8xf32>
    %102 = arith.maximumf %100, %101 : vector<64x8xf32>
    %c0_43 = arith.constant 0 : index
    %c0_44 = arith.constant 0 : index
    %103 = vector.load %arg11[%c0_43, %c0_44] : memref<8x8xf32, #tpu.memory_space<vmem>>, vector<8x8xf32>
    %cst_45 = arith.constant dense<0.000000e+00> : vector<64x8xf32>
    %104 = tpu.matmul %102, %103, %cst_45 {dimension_numbers = #tpu.dot_dimension_numbers<[1], [0], [0], [1], [0, 0, 1, 1], [], []>} : vector<64x8xf32>, vector<8x8xf32>, vector<64x8xf32> -> vector<64x8xf32>
    %c0_46 = arith.constant 0 : index
    %c0_47 = arith.constant 0 : index
    %105 = vector.load %arg12[%c0_46, %c0_47] : memref<1x8xf32, #tpu.memory_space<vmem>>, vector<1x8xf32>
    %106 = vector.broadcast %105 : vector<1x8xf32> to vector<64x8xf32>
    %107 = arith.mulf %104, %106 : vector<64x8xf32>
    %c0_48 = arith.constant 0 : index
    %c0_49 = arith.constant 0 : index
    %108 = vector.load %arg13[%c0_48, %c0_49] : memref<1x8xf32, #tpu.memory_space<vmem>>, vector<1x8xf32>
    %109 = vector.broadcast %108 : vector<1x8xf32> to vector<64x8xf32>
    %110 = arith.addf %107, %109 : vector<64x8xf32>
    %cst_50 = arith.constant 0.000000e+00 : f32
    %111 = vector.broadcast %cst_50 : f32 to vector<64x8xf32>
    %112 = arith.maximumf %110, %111 : vector<64x8xf32>
    %c0_51 = arith.constant 0 : index
    %c0_52 = arith.constant 0 : index
    %113 = vector.load %arg14[%c0_51, %c0_52] : memref<8x8xf32, #tpu.memory_space<vmem>>, vector<8x8xf32>
    %cst_53 = arith.constant dense<0.000000e+00> : vector<64x8xf32>
    %114 = tpu.matmul %112, %113, %cst_53 {dimension_numbers = #tpu.dot_dimension_numbers<[1], [0], [0], [1], [0, 0, 1, 1], [], []>} : vector<64x8xf32>, vector<8x8xf32>, vector<64x8xf32> -> vector<64x8xf32>
    %c0_54 = arith.constant 0 : index
    %c0_55 = arith.constant 0 : index
    %115 = vector.load %arg15[%c0_54, %c0_55] : memref<1x8xf32, #tpu.memory_space<vmem>>, vector<1x8xf32>
    %116 = vector.broadcast %115 : vector<1x8xf32> to vector<64x8xf32>
    %117 = arith.mulf %114, %116 : vector<64x8xf32>
    %c0_56 = arith.constant 0 : index
    %c0_57 = arith.constant 0 : index
    %118 = vector.load %arg16[%c0_56, %c0_57] : memref<1x8xf32, #tpu.memory_space<vmem>>, vector<1x8xf32>
    %119 = vector.broadcast %118 : vector<1x8xf32> to vector<64x8xf32>
    %120 = arith.addf %117, %119 : vector<64x8xf32>
    %cst_58 = arith.constant 0.000000e+00 : f32
    %121 = vector.broadcast %cst_58 : f32 to vector<64x8xf32>
    %122 = arith.maximumf %120, %121 : vector<64x8xf32>
    %123 = vector.extract_strided_slice %122 {offsets = [0, 0], sizes = [16, 8], strides = [1, 1]} : vector<64x8xf32> to vector<16x8xf32>
    %124 = vector.extract_strided_slice %122 {offsets = [16, 0], sizes = [16, 8], strides = [1, 1]} : vector<64x8xf32> to vector<16x8xf32>
    %125 = arith.addf %123, %124 : vector<16x8xf32>
    %126 = vector.extract_strided_slice %122 {offsets = [32, 0], sizes = [16, 8], strides = [1, 1]} : vector<64x8xf32> to vector<16x8xf32>
    %127 = arith.addf %125, %126 : vector<16x8xf32>
    %128 = vector.extract_strided_slice %122 {offsets = [48, 0], sizes = [16, 8], strides = [1, 1]} : vector<64x8xf32> to vector<16x8xf32>
    %129 = arith.addf %127, %128 : vector<16x8xf32>
    %cst_59 = arith.constant 2.500000e-01 : f32
    %130 = vector.broadcast %cst_59 : f32 to vector<16x8xf32>
    %131 = arith.mulf %129, %130 : vector<16x8xf32>
    %c0_60 = arith.constant 0 : index
    %c0_61 = arith.constant 0 : index
    %132 = vector.load %arg17[%c0_60, %c0_61] : memref<4x8xf32, #tpu.memory_space<vmem>>, vector<4x8xf32>
    %cst_62 = arith.constant dense<0.000000e+00> : vector<16x8xf32>
    %133 = tpu.matmul %2, %132, %cst_62 {dimension_numbers = #tpu.dot_dimension_numbers<[1], [0], [0], [1], [0, 0, 1, 1], [], []>} : vector<16x4xf32>, vector<4x8xf32>, vector<16x8xf32> -> vector<16x8xf32>
    %c0_63 = arith.constant 0 : index
    %c0_64 = arith.constant 0 : index
    %134 = vector.load %arg18[%c0_63, %c0_64] : memref<1x8xf32, #tpu.memory_space<vmem>>, vector<1x8xf32>
    %135 = vector.broadcast %134 : vector<1x8xf32> to vector<16x8xf32>
    %136 = arith.mulf %133, %135 : vector<16x8xf32>
    %c0_65 = arith.constant 0 : index
    %c0_66 = arith.constant 0 : index
    %137 = vector.load %arg19[%c0_65, %c0_66] : memref<1x8xf32, #tpu.memory_space<vmem>>, vector<1x8xf32>
    %138 = vector.broadcast %137 : vector<1x8xf32> to vector<16x8xf32>
    %139 = arith.addf %136, %138 : vector<16x8xf32>
    %140 = arith.addf %131, %139 : vector<16x8xf32>
    %cst_67 = arith.constant 0.000000e+00 : f32
    %141 = vector.broadcast %cst_67 : f32 to vector<16x8xf32>
    %142 = arith.maximumf %140, %141 : vector<16x8xf32>
    %c0_68 = arith.constant 0 : index
    %c0_69 = arith.constant 0 : index
    %143 = vector.load %arg20[%c0_68, %c0_69] : memref<16x8xf32, #tpu.memory_space<vmem>>, vector<16x8xf32>
    tpu.vector_store %arg20[%c0_68, %c0_69], %142 {strides = array<i32>} : memref<16x8xf32, #tpu.memory_space<vmem>>, vector<16x8xf32>,
    return
  }
  func.func @transform_0(%arg0: i32) -> (i32, i32) {
    %c0_i32 = arith.constant 0 : i32
    %c0_i32_0 = arith.constant 0 : i32
    return %arg0, %c0_i32 : i32, i32
  }
  func.func @transform_1(%arg0: i32) -> (i32, i32) {
    %c0_i32 = arith.constant 0 : i32
    %c0_i32_0 = arith.constant 0 : i32
    %c0_i32_1 = arith.constant 0 : i32
    return %c0_i32, %c0_i32_0 : i32, i32
  }
  func.func @transform_2(%arg0: i32) -> (i32, i32) {
    %c0_i32 = arith.constant 0 : i32
    %c0_i32_0 = arith.constant 0 : i32
    return %arg0, %c0_i32 : i32, i32
  }
  func.func @transform_3(%arg0: i32) -> (i32, i32) {
    %c0_i32 = arith.constant 0 : i32
    %c0_i32_0 = arith.constant 0 : i32
    %c0_i32_1 = arith.constant 0 : i32
    return %c0_i32, %c0_i32_0 : i32, i32
  }
  func.func @transform_4(%arg0: i32) -> (i32, i32) {
    %c0_i32 = arith.constant 0 : i32
    %c0_i32_0 = arith.constant 0 : i32
    return %arg0, %c0_i32 : i32, i32
  }
  func.func @transform_5(%arg0: i32) -> (i32, i32) {
    %c0_i32 = arith.constant 0 : i32
    %c0_i32_0 = arith.constant 0 : i32
    %c0_i32_1 = arith.constant 0 : i32
    return %c0_i32, %c0_i32_0 : i32, i32
  }
  func.func @transform_6(%arg0: i32) -> (i32, i32) {
    %c0_i32 = arith.constant 0 : i32
    %c0_i32_0 = arith.constant 0 : i32
    %c0_i32_1 = arith.constant 0 : i32
    return %c0_i32, %c0_i32_0 : i32, i32
  }
  func.func @transform_7(%arg0: i32) -> (i32, i32) {
    %c0_i32 = arith.constant 0 : i32
    %c0_i32_0 = arith.constant 0 : i32
    %c0_i32_1 = arith.constant 0 : i32
    return %c0_i32, %c0_i32_0 : i32, i32
  }
  func.func @transform_8(%arg0: i32) -> (i32, i32) {
    %c0_i32 = arith.constant 0 : i32
    %c0_i32_0 = arith.constant 0 : i32
    %c0_i32_1 = arith.constant 0 : i32
    return %c0_i32, %c0_i32_0 : i32, i32
  }
  func.func @transform_9(%arg0: i32) -> (i32, i32) {
    %c0_i32 = arith.constant 0 : i32
    %c0_i32_0 = arith.constant 0 : i32
    %c0_i32_1 = arith.constant 0 : i32
    return %c0_i32, %c0_i32_0 : i32, i32
  }
  func.func @transform_10(%arg0: i32) -> (i32, i32) {
    %c0_i32 = arith.constant 0 : i32
    %c0_i32_0 = arith.constant 0 : i32
    %c0_i32_1 = arith.constant 0 : i32
    return %c0_i32, %c0_i32_0 : i32, i32
  }
  func.func @transform_11(%arg0: i32) -> (i32, i32) {
    %c0_i32 = arith.constant 0 : i32
    %c0_i32_0 = arith.constant 0 : i32
    %c0_i32_1 = arith.constant 0 : i32
    return %c0_i32, %c0_i32_0 : i32, i32
  }
  func.func @transform_12(%arg0: i32) -> (i32, i32) {
    %c0_i32 = arith.constant 0 : i32
    %c0_i32_0 = arith.constant 0 : i32
    %c0_i32_1 = arith.constant 0 : i32
    return %c0_i32, %c0_i32_0 : i32, i32
  }
  func.func @transform_13(%arg0: i32) -> (i32, i32) {
    %c0_i32 = arith.constant 0 : i32
    %c0_i32_0 = arith.constant 0 : i32
    %c0_i32_1 = arith.constant 0 : i32
    return %c0_i32, %c0_i32_0 : i32, i32
  }
  func.func @transform_14(%arg0: i32) -> (i32, i32) {
    %c0_i32 = arith.constant 0 : i32
    %c0_i32_0 = arith.constant 0 : i32
    %c0_i32_1 = arith.constant 0 : i32
    return %c0_i32, %c0_i32_0 : i32, i32
  }
  func.func @transform_15(%arg0: i32) -> (i32, i32) {
    %c0_i32 = arith.constant 0 : i32
    %c0_i32_0 = arith.constant 0 : i32
    %c0_i32_1 = arith.constant 0 : i32
    return %c0_i32, %c0_i32_0 : i32, i32
  }
  func.func @transform_16(%arg0: i32) -> (i32, i32) {
    %c0_i32 = arith.constant 0 : i32
    %c0_i32_0 = arith.constant 0 : i32
    %c0_i32_1 = arith.constant 0 : i32
    return %c0_i32, %c0_i32_0 : i32, i32
  }
  func.func @transform_17(%arg0: i32) -> (i32, i32) {
    %c0_i32 = arith.constant 0 : i32
    %c0_i32_0 = arith.constant 0 : i32
    %c0_i32_1 = arith.constant 0 : i32
    return %c0_i32, %c0_i32_0 : i32, i32
  }
  func.func @transform_18(%arg0: i32) -> (i32, i32) {
    %c0_i32 = arith.constant 0 : i32
    %c0_i32_0 = arith.constant 0 : i32
    %c0_i32_1 = arith.constant 0 : i32
    return %c0_i32, %c0_i32_0 : i32, i32
  }
  func.func @transform_19(%arg0: i32) -> (i32, i32) {
    %c0_i32 = arith.constant 0 : i32
    %c0_i32_0 = arith.constant 0 : i32
    return %arg0, %c0_i32 : i32, i32
  }
}

</mosaic_0001>

<bundles_post_ra>
// kernel: tpu_custom_call.1
= control target key start
LH: loop header
LB: loop body
LE: loop exit
PB: predicated region body
PF: predicated region fallthrough
CT: control target
= control target key end

     0   :  { %s2593_s0 = inlined_call_operand.vmem [shape: f32[32,2], index: 0, kind: input, shape index: {}]   ;;  %s2594_s1 = inlined_call_operand.vmem [shape: f32[32,2], index: 1, kind: input, shape index: {}]   ;;  %s2595_s2 = inlined_call_operand.vmem [shape: f32[32,4], index: 2, kind: input, shape index: {}]   ;;  %s2596_s3 = inlined_call_operand.vmem [shape: f32[32,4], index: 3, kind: input, shape index: {}]   ;;  %s2597_s4 = inlined_call_operand.vmem [shape: s32[32,1], index: 4, kind: input, shape index: {}]   ;;  %s2598_s5 = inlined_call_operand.vmem [shape: s32[1,32], index: 5, kind: input, shape index: {}]   ;;  %s2599_s6 = inlined_call_operand.vmem [shape: f32[4,8], index: 6, kind: input, shape index: {}]   ;;  %s2600_s7 = inlined_call_operand.vmem [shape: f32[4,8], index: 7, kind: input, shape index: {}]   ;;  %s2601_s8 = inlined_call_operand.vmem [shape: f32[1,8], index: 8, kind: input, shape index: {}]   ;;  %s2602_s9 = inlined_call_operand.vmem [shape: f32[1,8], index: 9, kind: input, shape index: {}]   ;;  %s2603_s10 = inlined_call_operand.vmem [shape: f32[8,8], index: 10, kind: input, shape index: {}]   ;;  %s2604_s11 = inlined_call_operand.vmem [shape: f32[1,8], index: 11, kind: input, shape index: {}]   ;;  %s2605_s12 = inlined_call_operand.vmem [shape: f32[1,8], index: 12, kind: input, shape index: {}]   ;;  %s2606_s13 = inlined_call_operand.vmem [shape: f32[8,8], index: 13, kind: input, shape index: {}]   ;;  %s2607_s14 = inlined_call_operand.vmem [shape: f32[1,8], index: 14, kind: input, shape index: {}]   ;;  %s2608_s15 = inlined_call_operand.vmem [shape: f32[1,8], index: 15, kind: input, shape index: {}]   ;;  %s2609_s16 = inlined_call_operand.vmem [shape: f32[4,8], index: 16, kind: input, shape index: {}]   ;;  %s2610_s17 = inlined_call_operand.vmem [shape: f32[1,8], index: 17, kind: input, shape index: {}]   ;;  %s2611_s18 = inlined_call_operand.vmem [shape: f32[1,8], index: 18, kind: input, shape index: {}]   ;;  %s2612_s19 = inlined_call_operand.vmem [shape: f32[32,8], index: 19, kind: output, shape index: {}]  }
   0x1   :  { %2615 = sst [smem:[#allocation2_spill]] %s2593_s0  ;;  %s2312_s0 = smov 0  }
   0x2   :  { %2616 = sst [smem:[#allocation3_spill]] %s2594_s1 }
   0x3   :  { %2617 = sst [smem:[#allocation4_spill]] %s2595_s2 }
   0x4   :  { %2618 = sst [smem:[#allocation5_spill]] %s2596_s3 }
   0x5 LB: > { %s1921_s30 = sadd.s32 4294967295, %s2207_s0   ;;  %p1925_p0 = scmp.ge.s32.totalorder %s2207_s0, 1  ;;  %s2207_s0 = sphi %s2312_s0, %s29_s0  }
   0x6   : > { %p560_p1 = scmp.lt.s32.totalorder %s2207_s0, 3 }
   0x8   : > { %p561_p2 = pnand %p1925_p0, %p560_p1 }
   0x9   : > { %s2619_s1 = sld [smem:[#allocation3_spill]] (!%p561_p2)  ;;  %vm662_vm0 = vcmask (!%p561_p2), 15360   ;;  %s1926_s25 = sshll.u32 (!%p561_p2), %s1921_s30, 1  ;;  %v2209_v9 = vmov (!%p561_p2), 1.0   ;;  %v2210_v13 = vmov (!%p561_p2), 0   ;;  %v864_v23 = vlaneseq (!%p561_p2) }
   0xa   : > { %564 = sbr.rel (%p561_p2) target bundleno = 2304 (0x900), region = 96  ;;  %vm2333_vm1 = vmpackc.low (!%p561_p2), %vm662_vm0, %vm662_vm0  ;;  %p627_p3 = scmp.lt.s32.totalorder (!%p561_p2), %s1926_s25, 3  ;;  %2081 = vmatprep.mubr.msk.f32.mxu1 (!%p561_p2), %vm662_vm0, %v2209_v9  ;;  %2199 = vset.pattern.permute.xlu1 (!%p561_p2), %v2210_v13  ;;  %v1947_v32 = vld [vmem:[%s2598_s5] ss:$0 sm:$0xff] (!%p561_p2)  ;;  %vm895_vm8 = vcmask (!%p561_p2), 261120   ;;  %v2211_v63 = vmov (!%p561_p2), 0.0  }
   0xb   : > { %2200 = vset.pattern.permute.xlu0 (!%p561_p2), %v2210_v13  ;;  %s2622_s20 = sld [smem:[#allocation2_spill]] (!%p561_p2)  ;;  %v865_v24 = vshrl.u32 (!%p561_p2), %v864_v23, 7  ;;  %s1946_s24 = sshll.u32 (!%p561_p2), %s1921_s30, 4  ;;  %v872_v29 = vand.u32 (!%p561_p2), 127, %v864_v23  ;;  %vm1135_vm13 = vcmask (!%p561_p2), 1043456   ;;  %vm1128_vm14 = vcmask (!%p561_p2), 31744  }
   0xc   : > { %v868_v28 = vstv (!%p561_p2), %s1946_s24  ;;  %s2623_s28 = sld [smem:[#allocation5_spill]] (!%p561_p2)  ;;  %s2624_s26 = sld [smem:[#allocation4_spill]] (!%p561_p2) }
   0xd   : > { %v866_v26 = vadd.s32 (!%p561_p2), 8, %v865_v24  ;;  %v869_v31 = vadd.s32 (!%p561_p2), %v868_v28, %v865_v24  ;;  %v2385_v52 = vcvt.s32.f32 (!%p561_p2), %v872_v29 }
   0xf   : > { %v652_v0 = vld [vmem:[%s2619_s1] sm:$0xff] (!%p561_p2)  ;;  %v653_v1 = vld [vmem:[%s2619_s1 + $0x8] sm:$0xff] (!%p561_p2)  ;;  %v654_v2 = vld [vmem:[%s2619_s1 + $0x10] sm:$0xff] (!%p561_p2)  ;;  %v870_v30 = vadd.s32 (!%p561_p2), %v868_v28, %v866_v26  ;;  %vm888_vm4 = vcmp.ne.s32.totalorder (!%p561_p2), %v869_v31, %v872_v29 }
  0x10   : > { %v2156_v3 = vpack.c.bf16 (!%p561_p2), %v653_v1, %v652_v0  ;;  %v764_v5 = vmul.f32 (!%p561_p2), %v652_v0, %v652_v0  ;;  %v765_v6 = vmul.f32 (!%p561_p2), %v653_v1, %v653_v1  ;;  %v655_v7 = vld [vmem:[%s2619_s1 + $0x18] sm:$0xff] (!%p561_p2)  ;;  %v766_v8 = vmul.f32 (!%p561_p2), %v654_v2, %v654_v2 }
  0x11   : > { %v2162_v10 = vpack.c.bf16 %v655_v7, %v654_v2  ;;  %v767_v11 = vmul.f32 %v655_v7, %v655_v7  ;;  %s2626_s25 = smov (!%p627_p3, %s1926_s25), 3  ;;  %vm889_vm2 = vcmp.ne.s32.totalorder %v870_v30, %v872_v29  ;;  %v1127_v7 = vld [vmem:[%s2599_s6] sm:$0xf] }
  0x12   : > { %2158 = vmatprep.subr.msk.bf16.mxu0 %vm2333_vm1, %v2156_v3  ;;  %v2168_v12 = vpack.c.bf16 %v765_v6, %v764_v5  ;;  %s2349_s27 = sshll.u32 %s2626_s25, 3  ;;  %v658_v49 = vld [vmem:[%s2623_s28] sm:$0xff]  ;;  %v659_v50 = vld [vmem:[%s2623_s28 + $0x8] sm:$0xff]  ;;  %v660_v59 = vld [vmem:[%s2623_s28 + $0x10] sm:$0xff] }
  0x13   : > { %2161 = vmatpush3.bf16.xpose.msk.msra.mxu0 %vm2333_vm1, %v2156_v3  ;;  %v2174_v14 = vpack.c.bf16 %v767_v11, %v766_v8  ;;  %s630_s21 = scalar_lea.vmem %s2622_s20, %s2349_s27  ;;  %s642_s23 = scalar_lea.vmem %s2597_s4, %s2349_s27  ;;  %v2180_v51 = vpack.c.bf16 %v659_v50, %v658_v49  ;;  %v661_v60 = vld [vmem:[%s2623_s28 + $0x18] sm:$0xff] }
  0x14   : > { %2170 = vmatprep.subr.msk.bf16.mxu1 %vm2333_vm1, %v2168_v12  ;;  %2164 = vmatprep.subr.msk.bf16.mxu0 %vm2333_vm1, %v2162_v10  ;;  %v650_v15 = vld [vmem:[%s630_s21] sm:$0xff]  ;;  %v651_v16 = vld [vmem:[%s630_s21 + $0x8] sm:$0xff]  ;;  %v2184_v61 = vpack.c.bf16 %v661_v60, %v660_v59  ;;  %s636_s29 = scalar_lea.vmem %s2624_s26, %s2349_s27 }
  0x15   : > { %2173 = vmatpush3.bf16.xpose.msk.msra.mxu1 %vm2333_vm1, %v2168_v12  ;;  %2070 = vmatprep.mubr.msk.f32.mxu0 %vm662_vm0, %v650_v15  ;;  %v756_v17 = vmul.f32 %v650_v15, %v650_v15  ;;  %v757_v18 = vmul.f32 %v651_v16, %v651_v16  ;;  %v873_v19 = vld [vmem:[%s642_s23] sm:$0xff]  ;;  %v874_v21 = vld [vmem:[%s642_s23 + $0x8] sm:$0xff]  ;;  %s648_s23 = scalar_lea.vmem %s2612_s19, %s2349_s27 }
  0x16   : > { %2176 = vmatprep.subr.msk.bf16.mxu1 %vm2333_vm1, %v2174_v14  ;;  %877 = vperm.xlu1 %2199, %v873_v19   ;;  %v2414_v8 = vld [vmem:[%s636_s29 + $0x8] sm:$0xff] }
  0x17   : > { %v758_v20 = vsel %vm662_vm0, %v756_v17, 0.0  ;;  %v761_v22 = vsel %vm662_vm0, %v757_v18, 0.0 }
  0x18   : > { %759 = vadd.xlane.f32.xlu0 %v758_v20 }
  0x1a   : > { %880 = vperm.xlu1 %2199, %v874_v21  }
  0x1b   : > { %2167 = vmatpush3.bf16.xpose.msk.msra.mxu0 %vm2333_vm1, %v2162_v10  ;;  %v1214_v10 = vld [vmem:[%s2600_s7] sm:$0xf] }
  0x1c   : > { %762 = vadd.xlane.f32.xlu0 %v761_v22  ;;  %2181 = vmatprep.subr.bf16.mxu0 %v2180_v51 }
  0x1d   : > { %2179 = vmatpush3.bf16.xpose.msk.msra.mxu1 %vm2333_vm1, %v2174_v14 }
  0x1e   : > { %2104 = vmatprep.subr.msk.mxu1 %vm1135_vm13, %v1127_v7 }
  0x22   : > { %2071 = vmatmul.mubr.msk.f32.vlgmr.msra.gmra.mrb[0].mxu0 %vm662_vm0, %v651_v16 }
  0x23   : > { %2183 = vmatpush3.bf16.msra.mxu0 %v2180_v51 }
  0x24   : > { %2082 = vmatmul.mubr.msk.f32.vlgmr.msra.gmra.mrb[0].mxu1 %vm662_vm0, %v2209_v9  ;;  %2185 = vmatprep.subr.bf16.mxu0 %v2184_v61  ;;  %v2416_v9 = vld [vmem:[%s636_s29] sm:$0xff] }
  0x25   : > { %2105 = vmatpush3.msk.msra.mxu1 %vm1135_vm13, %v1127_v7  ;;  %2106 = vmatprep.mubr.msk.f32.mxu1 %vm1128_vm14, %v2416_v9 }
  0x26   : > { %2109 = vmatprep.subr.msk.mxu1 %vm1135_vm13, %v1214_v10 }
  0x27   : > { %2187 = vmatpush3.bf16.msra.mxu0 %v2184_v61 }
  0x28   : > { %2107 = vmatmul.mubr.msk.f32.vlgmr.msra.gmra.mrb[2].mxu1 %vm1128_vm14, %v2414_v8 }
  0x29   : > { %2110 = vmatpush3.msk.msra.mxu1 %vm1135_vm13, %v1214_v10  ;;  %v2487_v10 = vld [vmem:[%s2602_s9] ss:$0 sm:$0xff] }
  0x95   : > { %v878_v25 = vpop.permute.xlu1 %877 }
  0x96   : > { %vm886_vm5 = vcmp.eq.s32.totalorder %v878_v25, %v1947_v32 }
  0x97   : > { %vm890_vm7 = vmand %vm886_vm5, %vm888_vm4 }
  0x99   : > { %v881_v33 = vpop.permute.xlu1 %880 }
  0x9a   : > { %vm887_vm3 = vcmp.eq.s32.totalorder %v881_v33, %v1947_v32 }
  0x9b   : > { %vm891_vm6 = vmand %vm887_vm3, %vm889_vm2 }
  0xa5   : > { %v760_v27 = vpop.xlane.xlu0 %759 }
  0xa9   : > { %v763_v35 = vpop.xlane.xlu0 %762 }
  0xf5   : > { %v2072_v34 = vpop.f32.mrb[0].mxu0 }
  0xf6   : > { %v861_v36 = vmul.f32 2.0, %v2072_v34  ;;  %v747_v37 = vpop.f32.mrb[1].mxu0 }
  0xf7   : > { %v2083_v38 = vpop.f32.mrb[0].mxu1  ;;  %v860_v39 = vmul.f32 2.0, %v747_v37 }
  0xf8   : > { %v859_v40 = vadd.f32 %v2083_v38, %v763_v35  ;;  %v849_v41 = vpop.f32.mrb[1].mxu1 }
  0xf9   : > { %v858_v42 = vadd.f32 %v849_v41, %v760_v27 }
  0xfa   : > { %v863_v43 = vsub.f32 %v859_v40, %v861_v36 }
  0xfb   : > { %v862_v44 = vsub.f32 %v858_v42, %v860_v39  ;;  %v2443_v29 = vpop.f32.mrb[2].mxu1 }
  0xfc   : > { %v893_v45 = vsel %vm891_vm6, %v863_v43, 1e+30  ;;  %v2445_v30 = vpop.f32.mrb[3].mxu1 }
  0xfd   : > { %v899_v46 = vsel %vm895_vm8, %v893_v45, inf  ;;  %v892_v47 = vsel %vm890_vm7, %v862_v44, 1e+30 }
  0xfe   : > { %900 = vmin.xlane.f32.xlu1 %v899_v46  ;;  %v896_v48 = vsel %vm895_vm8, %v892_v47, inf }
  0xff   : > { %897 = vmin.xlane.f32.xlu0 %v896_v48 }
 0x18b   : > { %v901_v53 = vpop.xlane.xlu1 %900 }
 0x18c   : > { %v898_v54 = vpop.xlane.xlu0 %897  ;;  %vm903_vm9 = vcmp.eq.f32.partialorder %v893_v45, %v901_v53 }
 0x18d   : > { %vm902_vm10 = vcmp.eq.f32.partialorder %v892_v47, %v898_v54  ;;  %v905_v57 = vsel %vm903_vm9, %v2385_v52, 32.0 }
 0x18e   : > { %v904_v55 = vsel %vm902_vm10, %v2385_v52, 32.0  ;;  %v909_v58 = vsel %vm895_vm8, %v905_v57, inf }
 0x18f   : > { %v906_v56 = vsel %vm895_vm8, %v904_v55, inf }
 0x190   : > { %907 = vmin.xlane.f32.xlu0 %v906_v56 }
 0x194   : > { %910 = vmin.xlane.f32.xlu0 %v909_v58 }
 0x21d   : > { %v908_v62 = vpop.xlane.xlu0 %907 }
 0x21e   : > { %vm912_vm11 = vcmp.eq.f32.partialorder %v2385_v52, %v908_v62 }
 0x21f   : > { %v1948_v0 = vsel %vm912_vm11, 1.0, %v2211_v63  ;;  %v918_v1 = vsel %vm912_vm11, 1e+30, %v892_v47 }
 0x220   : > { %2092 = vmatprep.mubr.msk.f32.mxu0 %vm895_vm8, %v1948_v0  ;;  %v920_v2 = vsel %vm895_vm8, %v918_v1, inf }
 0x221   : > { %921 = vmin.xlane.f32.xlu0 %v920_v2  ;;  %v911_v3 = vpop.xlane.xlu0 %910 }
 0x222   : > { %vm913_vm12 = vcmp.eq.f32.partialorder %v2385_v52, %v911_v3 }
 0x223   : > { %v1949_v4 = vsel %vm913_vm12, 1.0, %v2211_v63  ;;  %v919_v5 = vsel %vm913_vm12, 1e+30, %v893_v45  ;;  %vm1394_vm12 = vcmask 64512  }
 0x224   : > { %2093 = vmatmul.mubr.msk.f32.vlgmr.msra.gmra.mrb[2].mxu0 %vm895_vm8, %v1949_v4  ;;  %v923_v6 = vsel %vm895_vm8, %v919_v5, inf }
 0x225   : > { %924 = vmin.xlane.f32.xlu0 %v923_v6  ;;  %v2481_v6 = vld [vmem:[%s2601_s8] ss:$0 sm:$0xff] }
 0x2ae   : > { %v922_v11 = vpop.xlane.xlu0 %921 }
 0x2af   : > { %vm926_vm15 = vcmp.eq.f32.partialorder %v918_v1, %v922_v11 }
 0x2b0   : > { %v928_v12 = vsel %vm926_vm15, %v2385_v52, 32.0 }
 0x2b1   : > { %v930_v13 = vsel %vm895_vm8, %v928_v12, inf }
 0x2b2   : > { %931 = vmin.xlane.f32.xlu0 %v930_v13  ;;  %v925_v14 = vpop.xlane.xlu0 %924 }
 0x2b3   : > { %vm927_vm0 = vcmp.eq.f32.partialorder %v919_v5, %v925_v14 }
 0x2b4   : > { %v929_v15 = vsel %vm927_vm0, %v2385_v52, 32.0 }
 0x2b5   : > { %v933_v16 = vsel %vm895_vm8, %v929_v15, inf }
 0x2b6   : > { %934 = vmin.xlane.f32.xlu0 %v933_v16 }
 0x2f7   : > { %v2094_v17 = vpop.f32.mrb[2].mxu0 }
 0x2f8   : > { %v1080_v18 = vpop.f32.mrb[3].mxu0  ;;  %v1120_v20 = vsub.f32 %v2094_v17, %v2414_v8 }
 0x2f9   : > { %v1119_v19 = vsub.f32 %v1080_v18, %v2416_v9 }
 0x2fb   : > { %2111 = vmatprep.mubr.msk.f32.mxu1 %vm1128_vm14, %v1119_v19 }
 0x2fc   : > { %2112 = vmatmul.mubr.msk.f32.vlgmr.msra.gmra.mrb[4].mxu1 %vm1128_vm14, %v1120_v20 }
 0x33f   : > { %v932_v21 = vpop.xlane.xlu0 %931 }
 0x340   : > { %vm936_vm1 = vcmp.eq.f32.partialorder %v2385_v52, %v932_v21 }
 0x341   : > { %v1950_v22 = vsel %vm936_vm1, 1.0, %v2211_v63  ;;  %v942_v23 = vsel %vm936_vm1, 1e+30, %v918_v1  ;;  %v1393_v1 = vld [vmem:[%s2603_s10] sm:$0xff] }
 0x342   : > { %2095 = vmatprep.mubr.msk.f32.mxu0 %vm895_vm8, %v1950_v22  ;;  %v944_v24 = vsel %vm895_vm8, %v942_v23, inf  ;;  %2123 = vmatprep.subr.mxu0 %v1393_v1 }
 0x343   : > { %945 = vmin.xlane.f32.xlu0 %v944_v24  ;;  %v935_v25 = vpop.xlane.xlu0 %934  ;;  %2124 = vmatpush3.msra.mxu0 %v1393_v1 }
 0x344   : > { %vm937_vm2 = vcmp.eq.f32.partialorder %v2385_v52, %v935_v25 }
 0x345   : > { %v1951_v26 = vsel %vm937_vm2, 1.0, %v2211_v63  ;;  %v943_v27 = vsel %vm937_vm2, 1e+30, %v919_v5 }
 0x346   : > { %2096 = vmatmul.mubr.msk.f32.gmra.mrb[4].mxu0 %vm895_vm8, %v1951_v26  ;;  %v947_v28 = vsel %vm895_vm8, %v943_v27, inf }
 0x347   : > { %948 = vmin.xlane.f32.xlu0 %v947_v28 }
 0x3cf   : > { %v2113_v31 = vpop.f32.mrb[4].mxu1 }
 0x3d0   : > { %v1348_v32 = vadd.f32 %v2113_v31, %v2443_v29  ;;  %v1308_v33 = vpop.f32.mrb[5].mxu1  ;;  %v946_v34 = vpop.xlane.xlu0 %945 }
 0x3d1   : > { %v1347_v35 = vadd.f32 %v1308_v33, %v2445_v30  ;;  %vm950_vm3 = vcmp.eq.f32.partialorder %v942_v23, %v946_v34 }
 0x3d2   : > { %v952_v36 = vsel %vm950_vm3, %v2385_v52, 32.0  ;;  %v1363_v12 = vmul.f32 %v2481_v6, %v1348_v32 }
 0x3d3   : > { %v954_v37 = vsel %vm895_vm8, %v952_v36, inf  ;;  %v1362_v7 = vmul.f32 %v2481_v6, %v1347_v35 }
 0x3d4   : > { %955 = vmin.xlane.f32.xlu0 %v954_v37  ;;  %v949_v38 = vpop.xlane.xlu0 %948  ;;  %v1378_v17 = vadd.f32 %v2487_v10, %v1363_v12 }
 0x3d5   : > { %vm951_vm4 = vcmp.eq.f32.partialorder %v943_v27, %v949_v38  ;;  %v1377_v13 = vadd.f32 %v2487_v10, %v1362_v7 }
 0x3d6   : > { %v953_v39 = vsel %vm951_vm4, %v2385_v52, 32.0  ;;  %v1386_v22 = vmax.f32 %v1378_v17, 0.0  ;;  %v1996_v17 = vld [vmem:[%s2607_s14] ss:$0 sm:$0xff] }
 0x3d7   : > { %v957_v40 = vsel %vm895_vm8, %v953_v39, inf  ;;  %v1385_v19 = vmax.f32 %v1377_v13, 0.0 }
 0x3d8   : > { %958 = vmin.xlane.f32.xlu1 %v957_v40  ;;  %v2521_v40 = vld [vmem:[%s2604_s11] ss:$0 sm:$0xff] }
 0x419   : > { %v2097_v41 = vpop.f32.mrb[4].mxu0 }
 0x41a   : > { %v1090_v42 = vpop.f32.mrb[5].mxu0  ;;  %v1122_v44 = vsub.f32 %v2097_v41, %v2414_v8 }
 0x41b   : > { %v1121_v43 = vsub.f32 %v1090_v42, %v2416_v9 }
 0x41d   : > { %2114 = vmatprep.mubr.msk.f32.mxu1 %vm1128_vm14, %v1121_v43  ;;  %v2528_v43 = vld [vmem:[%s2605_s12] ss:$0 sm:$0xff] }
 0x41e   : > { %2115 = vmatmul.mubr.msk.f32.gmra.mrb[6].mxu1 %vm1128_vm14, %v1122_v44 }
 0x461   : > { %v956_v45 = vpop.xlane.xlu0 %955 }
 0x462   : > { %vm960_vm5 = vcmp.eq.f32.partialorder %v2385_v52, %v956_v45 }
 0x463   : > { %v1952_v46 = vsel %vm960_vm5, 1.0, %v2211_v63  ;;  %v966_v47 = vsel %vm960_vm5, 1e+30, %v942_v23 }
 0x464   : > { %2098 = vmatprep.mubr.msk.f32.mxu0 %vm895_vm8, %v1952_v46  ;;  %v968_v48 = vsel %vm895_vm8, %v966_v47, inf }
 0x465   : > { %v959_v49 = vpop.xlane.xlu1 %958  ;;  %969 = vmin.xlane.f32.xlu0 %v968_v48 }
 0x466   : > { %vm961_vm6 = vcmp.eq.f32.partialorder %v2385_v52, %v959_v49 }
 0x467   : > { %v1953_v50 = vsel %vm961_vm6, 1.0, %v2211_v63  ;;  %v967_v51 = vsel %vm961_vm6, 1e+30, %v943_v27 }
 0x468   : > { %2099 = vmatmul.mubr.msk.f32.gmra.mrb[6].mxu0 %vm895_vm8, %v1953_v50  ;;  %v971_v53 = vsel %vm895_vm8, %v967_v51, inf }
 0x469   : > { %972 = vmin.xlane.f32.xlu1 %v971_v53 }
 0x4f1   : > { %v2116_v54 = vpop.f32.mrb[6].mxu1 }
 0x4f2   : > { %v1350_v55 = vadd.f32 %v2116_v54, %v2443_v29  ;;  %v1318_v56 = vpop.f32.mrb[7].mxu1  ;;  %v970_v57 = vpop.xlane.xlu0 %969 }
 0x4f3   : > { %v1349_v58 = vadd.f32 %v1318_v56, %v2445_v30  ;;  %vm974_vm7 = vcmp.eq.f32.partialorder %v966_v47, %v970_v57 }
 0x4f4   : > { %v976_v59 = vsel %vm974_vm7, %v2385_v52, 32.0  ;;  %v1365_v18 = vmul.f32 %v2481_v6, %v1350_v55 }
 0x4f5   : > { %v978_v60 = vsel %vm895_vm8, %v976_v59, inf  ;;  %v1364_v14 = vmul.f32 %v2481_v6, %v1349_v58 }
 0x4f6   : > { %v973_v61 = vpop.xlane.xlu1 %972  ;;  %979 = vmin.xlane.f32.xlu0 %v978_v60  ;;  %v1380_v23 = vadd.f32 %v2487_v10, %v1365_v18 }
 0x4f7   : > { %vm975_vm9 = vcmp.eq.f32.partialorder %v967_v51, %v973_v61  ;;  %v1379_v20 = vadd.f32 %v2487_v10, %v1364_v14 }
 0x4f8   : > { %v977_v62 = vsel %vm975_vm9, %v2385_v52, 32.0  ;;  %v1388_v25 = vmax.f32 %v1380_v23, 0.0 }
 0x4f9   : > { %v981_v0 = vsel %vm895_vm8, %v977_v62, inf  ;;  %v1387_v24 = vmax.f32 %v1379_v20, 0.0 }
 0x4fa   : > { %982 = vmin.xlane.f32.xlu1 %v981_v0 }
 0x53b   : > { %v2100_v2 = vpop.f32.mrb[6].mxu0 }
 0x53c   : > { %v1100_v3 = vpop.f32.mrb[7].mxu0  ;;  %v1124_v5 = vsub.f32 %v2100_v2, %v2414_v8 }
 0x53d   : > { %v1123_v4 = vsub.f32 %v1100_v3, %v2416_v9 }
 0x53f   : > { %2117 = vmatprep.mubr.msk.f32.mxu1 %vm1128_vm14, %v1123_v4 }
 0x540   : > { %2118 = vmatmul.mubr.msk.f32.gmra.mrb[8].mxu1 %vm1128_vm14, %v1124_v5 }
 0x583   : > { %v980_v11 = vpop.xlane.xlu0 %979 }
 0x584   : > { %vm984_vm10 = vcmp.eq.f32.partialorder %v2385_v52, %v980_v11 }
 0x585   : > { %v1954_v15 = vsel %vm984_vm10, 1.0, %v2211_v63 }
 0x586   : > { %2101 = vmatprep.mubr.msk.f32.mxu0 %vm895_vm8, %v1954_v15 }
 0x587   : > { %v983_v16 = vpop.xlane.xlu1 %982 }
 0x588   : > { %vm985_vm11 = vcmp.eq.f32.partialorder %v2385_v52, %v983_v16  ;;  %v1562_v52 = vld [vmem:[%s2606_s13] sm:$0xff] }
 0x589   : > { %v1955_v21 = vsel %vm985_vm11, 1.0, %v2211_v63  ;;  %2137 = vmatprep.subr.mxu1 %v1562_v52 }
 0x58a   : > { %2102 = vmatmul.mubr.msk.f32.gmra.mrb[8].mxu0 %vm895_vm8, %v1955_v21  ;;  %2138 = vmatpush3.msra.mxu1 %v1562_v52 }
 0x58b   : > { %2125 = vmatprep.mubr.msk.f32.mxu0 %vm1394_vm12, %v1385_v19 }
 0x58e   : > { %2126 = vmatmul.mubr.msk.f32.vlgmr.msra.gmra.mrb[10].mxu0 %vm1394_vm12, %v1386_v22 }
 0x58f   : > { %2128 = vmatprep.mubr.msk.f32.mxu0 %vm1394_vm12, %v1387_v24 }
 0x592   : > { %2129 = vmatmul.mubr.msk.f32.gmra.mrb[12].mxu0 %vm1394_vm12, %v1388_v25 }
 0x613   : > { %v2119_v63 = vpop.f32.mrb[8].mxu1 }
 0x614   : > { %v1352_v26 = vadd.f32 %v2119_v63, %v2443_v29  ;;  %v1328_v27 = vpop.f32.mrb[9].mxu1 }
 0x615   : > { %v1351_v28 = vadd.f32 %v1328_v27, %v2445_v30 }
 0x616   : > { %v1367_v31 = vmul.f32 %v2481_v6, %v1352_v26 }
 0x617   : > { %v1366_v32 = vmul.f32 %v2481_v6, %v1351_v28 }
 0x618   : > { %v1382_v33 = vadd.f32 %v2487_v10, %v1367_v31 }
 0x619   : > { %v1381_v34 = vadd.f32 %v2487_v10, %v1366_v32 }
 0x61a   : > { %v1390_v36 = vmax.f32 %v1382_v33, 0.0 }
 0x61b   : > { %v1389_v35 = vmax.f32 %v1381_v34, 0.0 }
 0x61d   : > { %2131 = vmatprep.mubr.msk.f32.mxu0 %vm1394_vm12, %v1389_v35  ;;  %v1738_v35 = vld [vmem:[%s2609_s16] sm:$0xf] }
 0x61e   : > { %2132 = vmatmul.mubr.msk.f32.gmra.mrb[14].mxu0 %vm1394_vm12, %v1390_v36  ;;  %2151 = vmatprep.subr.msk.mxu0 %vm1135_vm13, %v1738_v35 }
 0x61f   : > { %2152 = vmatpush3.msk.msra.mxu0 %vm1135_vm13, %v1738_v35 }
 0x65d   : > { %v2103_v37 = vpop.f32.mrb[8].mxu0 }
 0x65e   : > { %v1110_v38 = vpop.f32.mrb[9].mxu0  ;;  %v1126_v41 = vsub.f32 %v2103_v37, %v2414_v8 }
 0x65f   : > { %v1125_v39 = vsub.f32 %v1110_v38, %v2416_v9 }
 0x661   : > { %2120 = vmatprep.mubr.msk.f32.mxu1 %vm1128_vm14, %v1125_v39  ;;  %v2127_v42 = vpop.f32.mrb[10].mxu0 }
 0x662   : > { %v1532_v44 = vmul.f32 %v2127_v42, %v2521_v40  ;;  %2121 = vmatmul.mubr.msk.f32.gmra.mrb[10].mxu1 %vm1128_vm14, %v1126_v41  ;;  %v1485_v45 = vpop.f32.mrb[11].mxu0 }
 0x663   : > { %v1531_v46 = vmul.f32 %v2521_v40, %v1485_v45 }
 0x664   : > { %v1547_v47 = vadd.f32 %v2528_v43, %v1532_v44 }
 0x665   : > { %v1546_v48 = vadd.f32 %v2528_v43, %v1531_v46  ;;  %v2130_v49 = vpop.f32.mrb[12].mxu0 }
 0x666   : > { %v1534_v50 = vmul.f32 %v2130_v49, %v2521_v40  ;;  %v1495_v51 = vpop.f32.mrb[13].mxu0  ;;  %v1555_v55 = vmax.f32 %v1547_v47, 0.0 }
 0x667   : > { %v1554_v53 = vmax.f32 %v1546_v48, 0.0  ;;  %v1533_v54 = vmul.f32 %v2521_v40, %v1495_v51 }
 0x668   : > { %v1549_v56 = vadd.f32 %v2528_v43, %v1534_v50 }
 0x669   : > { %v1548_v57 = vadd.f32 %v2528_v43, %v1533_v54  ;;  %2139 = vmatprep.mubr.msk.f32.mxu1 %vm1394_vm12, %v1554_v53 }
 0x66a   : > { %2140 = vmatmul.mubr.msk.f32.vlgmr.msra.gmra.mrb[12].mxu1 %vm1394_vm12, %v1555_v55  ;;  %v1557_v59 = vmax.f32 %v1549_v56, 0.0 }
 0x66b   : > { %v1556_v58 = vmax.f32 %v1548_v57, 0.0 }
 0x66d   : > { %2142 = vmatprep.mubr.msk.f32.mxu1 %vm1394_vm12, %v1556_v58  ;;  %v2001_v58 = vld [vmem:[%s2610_s17] ss:$0 sm:$0xff] }
 0x66e   : > { %2143 = vmatmul.mubr.msk.f32.gmra.mrb[14].mxu1 %vm1394_vm12, %v1557_v59 }
 0x6f1   : > { %v2133_v60 = vpop.f32.mrb[14].mxu0 }
 0x6f2   : > { %v1536_v61 = vmul.f32 %v2133_v60, %v2521_v40  ;;  %v1505_v62 = vpop.f32.mrb[15].mxu0 }
 0x6f3   : > { %v1535_v0 = vmul.f32 %v2521_v40, %v1505_v62 }
 0x6f4   : > { %v1551_v1 = vadd.f32 %v2528_v43, %v1536_v61 }
 0x6f5   : > { %v1550_v2 = vadd.f32 %v2528_v43, %v1535_v0  ;;  %v2002_v0 = vld [vmem:[%s2611_s18] ss:$0 sm:$0xff] }
 0x6f6   : > { %v1559_v4 = vmax.f32 %v1551_v1, 0.0 }
 0x6f7   : > { %v1558_v3 = vmax.f32 %v1550_v2, 0.0 }
 0x6f9   : > { %2145 = vmatprep.mubr.msk.f32.mxu1 %vm1394_vm12, %v1558_v3 }
 0x6fa   : > { %2146 = vmatmul.mubr.msk.f32.gmra.mrb[16].mxu1 %vm1394_vm12, %v1559_v4 }
 0x735   : > { %v2122_v5 = vpop.f32.mrb[10].mxu1 }
 0x736   : > { %v1354_v7 = vadd.f32 %v2122_v5, %v2443_v29  ;;  %v1338_v11 = vpop.f32.mrb[11].mxu1 }
 0x737   : > { %v1353_v12 = vadd.f32 %v1338_v11, %v2445_v30  ;;  %v1997_v30 = vld [vmem:[%s2608_s15] ss:$0 sm:$0xff] }
 0x738   : > { %v1369_v13 = vmul.f32 %v2481_v6, %v1354_v7 }
 0x739   : > { %v1368_v14 = vmul.f32 %v2481_v6, %v1353_v12 }
 0x73a   : > { %v1384_v15 = vadd.f32 %v2487_v10, %v1369_v13 }
 0x73b   : > { %v1383_v16 = vadd.f32 %v2487_v10, %v1368_v14 }
 0x73c   : > { %v1392_v20 = vmax.f32 %v1384_v15, 0.0 }
 0x73d   : > { %v1391_v18 = vmax.f32 %v1383_v16, 0.0  ;;  %v2141_v19 = vpop.f32.mrb[12].mxu1 }
 0x73e   : > { %v1700_v21 = vmul.f32 %v2141_v19, %v1996_v17  ;;  %v1653_v29 = vpop.f32.mrb[13].mxu1 }
 0x73f   : > { %v1699_v22 = vmul.f32 %v1996_v17, %v1653_v29  ;;  %2134 = vmatprep.mubr.msk.f32.mxu0 %vm1394_vm12, %v1391_v18 }
 0x740   : > { %2135 = vmatmul.mubr.msk.f32.gmra.mrb[16].mxu0 %vm1394_vm12, %v1392_v20  ;;  %v1715_v10 = vadd.f32 %v1997_v30, %v1700_v21 }
 0x741   : > { %v2144_v6 = vpop.f32.mrb[14].mxu1  ;;  %2153 = vmatprep.mubr.msk.f32.mxu0 %vm1128_vm14, %v2416_v9  ;;  %v1714_v25 = vadd.f32 %v1997_v30, %v1699_v22 }
 0x742   : > { %v1702_v23 = vmul.f32 %v2144_v6, %v1996_v17  ;;  %v1663_v24 = vpop.f32.mrb[15].mxu1  ;;  %v1723_v27 = vmax.f32 %v1715_v10, 0.0 }
 0x743   : > { %v1701_v52 = vmul.f32 %v1996_v17, %v1663_v24  ;;  %v1722_v31 = vmax.f32 %v1714_v25, 0.0 }
 0x744   : > { %v1717_v63 = vadd.f32 %v1997_v30, %v1702_v23  ;;  %2154 = vmatmul.mubr.msk.f32.vlgmr.msra.gmra.mrb[18].mxu0 %vm1128_vm14, %v2414_v8 }
 0x745   : > { %v1716_v26 = vadd.f32 %v1997_v30, %v1701_v52 }
 0x746   : > { %v1725_v28 = vmax.f32 %v1717_v63, 0.0 }
 0x747   : > { %v1724_v32 = vmax.f32 %v1716_v26, 0.0 }
 0x748   : > { %v1731_v33 = vadd.f32 %v1725_v28, %v1723_v27 }
 0x749   : > { %v1730_v34 = vadd.f32 %v1724_v32, %v1722_v31 }
 0x7cd   : > { %v2147_v9 = vpop.f32.mrb[16].mxu1 }
 0x7ce   : > { %v1704_v36 = vmul.f32 %v2147_v9, %v1996_v17  ;;  %v1673_v37 = vpop.f32.mrb[17].mxu1 }
 0x7cf   : > { %v1703_v38 = vmul.f32 %v1996_v17, %v1673_v37 }
 0x7d0   : > { %v1719_v39 = vadd.f32 %v1997_v30, %v1704_v36 }
 0x7d1   : > { %v1718_v41 = vadd.f32 %v1997_v30, %v1703_v38 }
 0x7d2   : > { %v1727_v42 = vmax.f32 %v1719_v39, 0.0 }
 0x7d3   : > { %v1726_v44 = vmax.f32 %v1718_v41, 0.0 }
 0x7d4   : > { %v1733_v45 = vadd.f32 %v1731_v33, %v1727_v42 }
 0x7d5   : > { %v1732_v46 = vadd.f32 %v1730_v34, %v1726_v44 }
 0x813   : > { %v2136_v47 = vpop.f32.mrb[16].mxu0 }
 0x814   : > { %v1538_v48 = vmul.f32 %v2136_v47, %v2521_v40  ;;  %v1515_v49 = vpop.f32.mrb[17].mxu0 }
 0x815   : > { %v1537_v50 = vmul.f32 %v2521_v40, %v1515_v49 }
 0x816   : > { %v1553_v51 = vadd.f32 %v2528_v43, %v1538_v48 }
 0x817   : > { %v1552_v8 = vadd.f32 %v2528_v43, %v1537_v50  ;;  %v2155_v55 = vpop.f32.mrb[18].mxu0 }
 0x818   : > { %v1561_v54 = vmax.f32 %v1553_v51, 0.0  ;;  %v1808_v56 = vpop.f32.mrb[19].mxu0  ;;  %v1825_v62 = vmul.f32 %v2155_v55, %v2001_v58 }
 0x819   : > { %v1560_v53 = vmax.f32 %v1552_v8, 0.0  ;;  %v1824_v1 = vmul.f32 %v2001_v58, %v1808_v56 }
 0x81a   : > { %v1834_v5 = vadd.f32 %v2002_v0, %v1825_v62 }
 0x81b   : > { %2148 = vmatprep.mubr.msk.f32.mxu1 %vm1394_vm12, %v1560_v53  ;;  %v1833_v11 = vadd.f32 %v2002_v0, %v1824_v1 }
 0x81c   : > { %2149 = vmatmul.mubr.msk.f32.gmra.mrb[18].mxu1 %vm1394_vm12, %v1561_v54 }
 0x8ef   : > { %v2150_v57 = vpop.f32.mrb[18].mxu1 }
 0x8f0   : > { %v1706_v59 = vmul.f32 %v2150_v57, %v1996_v17  ;;  %v1683_v60 = vpop.f32.mrb[19].mxu1 }
 0x8f1   : > { %v1705_v40 = vmul.f32 %v1996_v17, %v1683_v60 }
 0x8f2   : > { %v1721_v61 = vadd.f32 %v1997_v30, %v1706_v59 }
 0x8f3   : > { %v1720_v43 = vadd.f32 %v1997_v30, %v1705_v40 }
 0x8f4   : > { %v1729_v2 = vmax.f32 %v1721_v61, 0.0 }
 0x8f5   : > { %v1728_v3 = vmax.f32 %v1720_v43, 0.0 }
 0x8f6   : > { %v1735_v4 = vadd.f32 %v1733_v45, %v1729_v2 }
 0x8f7   : > { %v1734_v7 = vadd.f32 %v1732_v46, %v1728_v3 }
 0x8f8   : > { %v1737_v12 = vmul.f32 0.25, %v1735_v4 }
 0x8f9   : > { %v1736_v13 = vmul.f32 0.25, %v1734_v7 }
 0x8fa   : > { %v1836_v14 = vadd.f32 %v1834_v5, %v1737_v12 }
 0x8fb   : > { %v1835_v15 = vadd.f32 %v1833_v11, %v1736_v13 }
 0x8fc   : > { %v1838_v17 = vmax.f32 %v1836_v14, 0.0 }
 0x8fd   : > { %v1837_v16 = vmax.f32 %v1835_v15, 0.0 }
 0x8fe   : > { %1840 = vst.msk [vmem:[%s648_s23 + $0x8] sm:$0xff] %vm1394_vm12, %v1838_v17 }
 0x8ff   : > { %1839 = vst.msk [vmem:[%s648_s23] sm:$0xff] %vm1394_vm12, %v1837_v16 }
 0x900 PF: > { %s29_s0 = sadd.s32 1, %s2207_s0  }
 0x901   : > { %p26_p4 = scmp.ge.s32.totalorder %s29_s0, 4  }
 0x903   :  { %28 = sbr.rel (!%p26_p4) target bundleno = 5 (0x5), region = 132 }

</bundles_post_ra>
